<compile_context>
chip_gen: v5e
topology: v5e:2x2
jax: 0.10.0
libtpu: 0.0.40
codegen_flags: <defaults>
</compile_context>

<pallas_src>
import jax
import jax.numpy as jnp
from jax.experimental import pallas as pl
from jax.experimental.pallas import tpu as pltpu

_HIDDEN = 512
_EPS = 1e-12


def _round_up(x, m):
    return (x + m - 1) // m * m


def _l2_normalize(x, eps=_EPS):
    # torch.nn.functional.normalize(p=2, dim=-1): x / max(||x||_2, eps)
    # rsqrt(max(ss, eps^2)) == 1 / max(sqrt(ss), eps)  -> one EUP op + one VPU mul
    ss = jnp.sum(x * x, axis=-1, keepdims=True)
    return x * jax.lax.rsqrt(jnp.maximum(ss, eps * eps))


def decoder_kernel(z_ref, c_ref,
                   w1z_ref, w1c_ref, b1_ref,
                   w2_ref, b2_ref,
                   w3_ref, b3_ref,
                   o_ref):
    # normalize in f32 on the VPU/EUP
    zn = _l2_normalize(z_ref[...].astype(jnp.float32))
    cn = _l2_normalize(c_ref[...].astype(jnp.float32))

    # layer 1: cat([zn, cn]) @ W1 + b1, split into two bf16 MXU matmuls (f32 acc)
    h1 = (jnp.dot(zn.astype(jnp.bfloat16), w1z_ref[...],
                  preferred_element_type=jnp.float32)
          + jnp.dot(cn.astype(jnp.bfloat16), w1c_ref[...],
                    preferred_element_type=jnp.float32)
          + b1_ref[...])
    h1 = jnp.maximum(h1, 0.0)

    # layer 2
    h2 = (jnp.dot(h1.astype(jnp.bfloat16), w2_ref[...],
                  preferred_element_type=jnp.float32)
          + b2_ref[...])
    h2 = jnp.maximum(h2, 0.0)

    # layer 3 (no activation), lane-dense padded output
    o_ref[...] = (jnp.dot(h2.astype(jnp.bfloat16), w3_ref[...],
                          preferred_element_type=jnp.float32)
                  + b3_ref[...]).astype(o_ref.dtype)


@jax.jit
def decoder_forward(z, cond, params):
    w1, b1, w2, b2, w3, b3 = params
    batch, latent_dim = z.shape
    cond_dim = cond.shape[1]
    hidden = w1.shape[1]
    out_dim = w3.shape[1]

    # batch tile: fill the MXU M-dim (>=256 on v6e/v7x) but don't exceed the
    # (8-aligned) batch; also keeps per-tile VMEM tiny vs. v7x's 64 MiB.
    tb = min(512, _round_up(batch, 8))
    grid = (pl.cdiv(batch, tb),)

    # lane-dense output: pad out_dim up to a multiple of 128, slice afterwards.
    out_pad = _round_up(out_dim, 128)

    # split W1 into z/cond blocks (avoids in-kernel concat); bf16 weights for MXU.
    w1z = w1[:latent_dim, :].astype(jnp.bfloat16)
    w1c = w1[latent_dim:, :].astype(jnp.bfloat16)
    w2b = w2.astype(jnp.bfloat16)
    w3p = jnp.zeros((hidden, out_pad), jnp.bfloat16).at[:, :out_dim].set(
        w3.astype(jnp.bfloat16))
    b3p = jnp.zeros((1, out_pad), jnp.float32).at[:, :out_dim].set(b3[None, :])

    def resident(shape):
        # constant index_map -> weight/bias block stays VMEM-resident across grid
        return pl.BlockSpec(shape, lambda i: (0, 0))

    cost = pl.CostEstimate(
        flops=2 * batch * ((latent_dim + cond_dim) * hidden
                           + hidden * hidden
                           + hidden * out_pad),
        transcendentals=2 * batch,  # one rsqrt per row for z and for cond
        bytes_accessed=(z.size * 4 + cond.size * 4                     # inputs
                        + (w1.size + w2.size + hidden * out_pad) * 2   # bf16 weights
                        + (2 * hidden + hidden + out_pad) * 4          # biases
                        + batch * out_pad * 4),                        # output
    )

    out = pl.pallas_call(
        decoder_kernel,
        out_shape=jax.ShapeDtypeStruct((batch, out_pad), jnp.float32),
        grid=grid,
        in_specs=[
            pl.BlockSpec((tb, latent_dim), lambda i: (i, 0)),   # z tile
            pl.BlockSpec((tb, cond_dim), lambda i: (i, 0)),     # cond tile
            resident((latent_dim, hidden)),                     # W1[:L]
            resident((cond_dim, hidden)),                       # W1[L:]
            resident((1, hidden)),                              # b1
            resident((hidden, hidden)),                         # W2
            resident((1, hidden)),                              # b2
            resident((hidden, out_pad)),                        # W3 (padded)
            resident((1, out_pad)),                             # b3 (padded)
        ],
        out_specs=pl.BlockSpec((tb, out_pad), lambda i: (i, 0)),
        compiler_params=pltpu.CompilerParams(
            dimension_semantics=("parallel",)),
        cost_estimate=cost,
    )(z, cond, w1z, w1c, b1[None, :], w2b, b2[None, :], w3p, b3p)

    return out[:, :out_dim]


def init_decoder_params(key, latent_dim, output_dim, cond_dim, hidden=_HIDDEN):
    """Deterministic init mimicking PyTorch Linear default (uniform +-1/sqrt(fan_in)).
    Weights returned as (in_features, out_features)."""
    def linear(k, fan_in, fan_out):
        kw, kb = jax.random.split(k)
        bound = 1.0 / jnp.sqrt(fan_in)
        w = jax.random.uniform(kw, (fan_in, fan_out), jnp.float32, -bound, bound)
        b = jax.random.uniform(kb, (fan_out,), jnp.float32, -bound, bound)
        return w, b

    k1, k2, k3 = jax.random.split(key, 3)
    w1, b1 = linear(k1, latent_dim + cond_dim, hidden)
    w2, b2 = linear(k2, hidden, hidden)
    w3, b3 = linear(k3, hidden, output_dim)
    return (w1, b1, w2, b2, w3, b3)


def decoder_reference_bf16(z, cond, params):
    """Same math as the kernel: f32 normalize, bf16 matmul operands, f32 acc."""
    w1, b1, w2, b2, w3, b3 = params
    zn = _l2_normalize(z)
    cn = _l2_normalize(cond)
    x = jnp.concatenate([zn, cn], axis=-1).astype(jnp.bfloat16)
    h1 = jnp.maximum(
        jnp.dot(x, w1.astype(jnp.bfloat16),
                preferred_element_type=jnp.float32) + b1, 0.0)
    h2 = jnp.maximum(
        jnp.dot(h1.astype(jnp.bfloat16), w2.astype(jnp.bfloat16),
                preferred_element_type=jnp.float32) + b2, 0.0)
    return (jnp.dot(h2.astype(jnp.bfloat16), w3.astype(jnp.bfloat16),
                    preferred_element_type=jnp.float32) + b3)


def decoder_reference_f32(z, cond, params):
    w1, b1, w2, b2, w3, b3 = params
    zn = _l2_normalize(z)
    cn = _l2_normalize(cond)
    x = jnp.concatenate([zn, cn], axis=-1)
    x = jnp.maximum(x @ w1 + b1, 0.0)
    x = jnp.maximum(x @ w2 + b2, 0.0)
    return x @ w3 + b3


if __name__ == "__main__":
    batch = 8
    latent_dim = 16
    cond_dim = 8
    output_dim = 32

    key = jax.random.PRNGKey(0)
    kz, kc, kp = jax.random.split(key, 3)
    z = jax.random.normal(kz, (batch, latent_dim), jnp.float32)
    cond = jax.random.normal(kc, (batch, cond_dim), jnp.float32)
    params = init_decoder_params(kp, latent_dim, output_dim, cond_dim)

    out = decoder_forward(z, cond, params)
    out = jax.block_until_ready(out)
    assert out.shape == (batch, output_dim), out.shape

    # tight check vs. a reference that does the same bf16-operand / f32-acc math
    ref_bf16 = decoder_reference_bf16(z, cond, params)
    assert jnp.allclose(out, ref_bf16, atol=1e-2, rtol=1e-2), \
        "mismatch vs bf16-matched reference"

    # loose sanity check vs. the full-f32 reference (bf16 weight quantization)
    ref_f32 = decoder_reference_f32(z, cond, params)
    assert jnp.allclose(out, ref_f32, atol=5e-2, rtol=5e-2), \
        "mismatch vs f32 reference"

    print("KERNEL_OK")
</pallas_src>

<mosaic_0001>
module attributes {stable_mosaic.version = 11 : i64} {
  func.func @decoder_kernel(%arg0: i32, %arg1: memref<8x16xf32, #tpu.memory_space<vmem>>, %arg2: memref<8x8xf32, #tpu.memory_space<vmem>>, %arg3: memref<16x512xbf16, #tpu.memory_space<vmem>>, %arg4: memref<8x512xbf16, #tpu.memory_space<vmem>>, %arg5: memref<1x512xf32, #tpu.memory_space<vmem>>, %arg6: memref<512x512xbf16, #tpu.memory_space<vmem>>, %arg7: memref<1x512xf32, #tpu.memory_space<vmem>>, %arg8: memref<512x128xbf16, #tpu.memory_space<vmem>>, %arg9: memref<1x128xf32, #tpu.memory_space<vmem>>, %arg10: memref<8x128xf32, #tpu.memory_space<vmem>>) attributes {dimension_semantics = [#tpu.dimension_semantics<parallel>], iteration_bounds = array<i64: 1>, scalar_prefetch = 0 : i64, scratch_operands = 0 : i64, tpu.core_type = #tpu.core_type<tc>, window_params = [{transform_indices = @transform_0, window_bounds = array<i64: 8, 16>}, {transform_indices = @transform_1, window_bounds = array<i64: 8, 8>}, {pipeline_mode = #tpu.pipeline_mode<synchronous>, transform_indices = @transform_2, window_bounds = array<i64: 16, 512>}, {pipeline_mode = #tpu.pipeline_mode<synchronous>, transform_indices = @transform_3, window_bounds = array<i64: 8, 512>}, {pipeline_mode = #tpu.pipeline_mode<synchronous>, transform_indices = @transform_4, window_bounds = array<i64: 1, 512>}, {pipeline_mode = #tpu.pipeline_mode<synchronous>, transform_indices = @transform_5, window_bounds = array<i64: 512, 512>}, {pipeline_mode = #tpu.pipeline_mode<synchronous>, transform_indices = @transform_6, window_bounds = array<i64: 1, 512>}, {pipeline_mode = #tpu.pipeline_mode<synchronous>, transform_indices = @transform_7, window_bounds = array<i64: 512, 128>}, {pipeline_mode = #tpu.pipeline_mode<synchronous>, transform_indices = @transform_8, window_bounds = array<i64: 1, 128>}, {transform_indices = @transform_9, window_bounds = array<i64: 8, 128>}]} {
    %c0 = arith.constant 0 : index
    %c0_0 = arith.constant 0 : index
    %0 = vector.load %arg1[%c0, %c0_0] : memref<8x16xf32, #tpu.memory_space<vmem>>, vector<8x16xf32>
    %1 = arith.mulf %0, %0 : vector<8x16xf32>
    %cst = arith.constant dense<0.000000e+00> : vector<8xf32>
    %2 = vector.multi_reduction <add>, %1, %cst [1] : vector<8x16xf32> to vector<8xf32>
    %3 = vector.shape_cast %2 : vector<8xf32> to vector<8x1xf32>
    %cst_1 = arith.constant 1.000000e-24 : f32
    %4 = vector.broadcast %cst_1 : f32 to vector<8x1xf32>
    %5 = arith.maximumf %3, %4 : vector<8x1xf32>
    %6 = math.rsqrt %5 : vector<8x1xf32>
    %7 = vector.broadcast %6 : vector<8x1xf32> to vector<8x16xf32>
    %8 = arith.mulf %0, %7 : vector<8x16xf32>
    %c0_2 = arith.constant 0 : index
    %c0_3 = arith.constant 0 : index
    %9 = vector.load %arg2[%c0_2, %c0_3] : memref<8x8xf32, #tpu.memory_space<vmem>>, vector<8x8xf32>
    %10 = arith.mulf %9, %9 : vector<8x8xf32>
    %cst_4 = arith.constant dense<0.000000e+00> : vector<8xf32>
    %11 = vector.multi_reduction <add>, %10, %cst_4 [1] : vector<8x8xf32> to vector<8xf32>
    %12 = vector.shape_cast %11 : vector<8xf32> to vector<8x1xf32>
    %cst_5 = arith.constant 1.000000e-24 : f32
    %13 = vector.broadcast %cst_5 : f32 to vector<8x1xf32>
    %14 = arith.maximumf %12, %13 : vector<8x1xf32>
    %15 = math.rsqrt %14 : vector<8x1xf32>
    %16 = vector.broadcast %15 : vector<8x1xf32> to vector<8x8xf32>
    %17 = arith.mulf %9, %16 : vector<8x8xf32>
    %18 = arith.truncf %8 : vector<8x16xf32> to vector<8x16xbf16>
    %c0_6 = arith.constant 0 : index
    %c0_7 = arith.constant 0 : index
    %19 = vector.load %arg3[%c0_6, %c0_7] : memref<16x512xbf16, #tpu.memory_space<vmem>>, vector<16x512xbf16>
    %cst_8 = arith.constant dense<0.000000e+00> : vector<8x512xf32>
    %20 = tpu.matmul %18, %19, %cst_8 {dimension_numbers = #tpu.dot_dimension_numbers<[1], [0], [0], [1], [0, 0, 1, 1], [], []>} : vector<8x16xbf16>, vector<16x512xbf16>, vector<8x512xf32> -> vector<8x512xf32>
    %21 = arith.truncf %17 : vector<8x8xf32> to vector<8x8xbf16>
    %c0_9 = arith.constant 0 : index
    %c0_10 = arith.constant 0 : index
    %22 = vector.load %arg4[%c0_9, %c0_10] : memref<8x512xbf16, #tpu.memory_space<vmem>>, vector<8x512xbf16>
    %cst_11 = arith.constant dense<0.000000e+00> : vector<8x512xf32>
    %23 = tpu.matmul %21, %22, %cst_11 {dimension_numbers = #tpu.dot_dimension_numbers<[1], [0], [0], [1], [0, 0, 1, 1], [], []>} : vector<8x8xbf16>, vector<8x512xbf16>, vector<8x512xf32> -> vector<8x512xf32>
    %24 = arith.addf %20, %23 : vector<8x512xf32>
    %c0_12 = arith.constant 0 : index
    %c0_13 = arith.constant 0 : index
    %25 = vector.load %arg5[%c0_12, %c0_13] : memref<1x512xf32, #tpu.memory_space<vmem>>, vector<1x512xf32>
    %26 = vector.broadcast %25 : vector<1x512xf32> to vector<8x512xf32>
    %27 = arith.addf %24, %26 : vector<8x512xf32>
    %cst_14 = arith.constant 0.000000e+00 : f32
    %28 = vector.broadcast %cst_14 : f32 to vector<8x512xf32>
    %29 = arith.maximumf %27, %28 : vector<8x512xf32>
    %30 = arith.truncf %29 : vector<8x512xf32> to vector<8x512xbf16>
    %c0_15 = arith.constant 0 : index
    %c0_16 = arith.constant 0 : index
    %31 = vector.load %arg6[%c0_15, %c0_16] : memref<512x512xbf16, #tpu.memory_space<vmem>>, vector<512x512xbf16>
    %cst_17 = arith.constant dense<0.000000e+00> : vector<8x512xf32>
    %32 = tpu.matmul %30, %31, %cst_17 {dimension_numbers = #tpu.dot_dimension_numbers<[1], [0], [0], [1], [0, 0, 1, 1], [], []>} : vector<8x512xbf16>, vector<512x512xbf16>, vector<8x512xf32> -> vector<8x512xf32>
    %c0_18 = arith.constant 0 : index
    %c0_19 = arith.constant 0 : index
    %33 = vector.load %arg7[%c0_18, %c0_19] : memref<1x512xf32, #tpu.memory_space<vmem>>, vector<1x512xf32>
    %34 = vector.broadcast %33 : vector<1x512xf32> to vector<8x512xf32>
    %35 = arith.addf %32, %34 : vector<8x512xf32>
    %cst_20 = arith.constant 0.000000e+00 : f32
    %36 = vector.broadcast %cst_20 : f32 to vector<8x512xf32>
    %37 = arith.maximumf %35, %36 : vector<8x512xf32>
    %38 = arith.truncf %37 : vector<8x512xf32> to vector<8x512xbf16>
    %c0_21 = arith.constant 0 : index
    %c0_22 = arith.constant 0 : index
    %39 = vector.load %arg8[%c0_21, %c0_22] : memref<512x128xbf16, #tpu.memory_space<vmem>>, vector<512x128xbf16>
    %cst_23 = arith.constant dense<0.000000e+00> : vector<8x128xf32>
    %40 = tpu.matmul %38, %39, %cst_23 {dimension_numbers = #tpu.dot_dimension_numbers<[1], [0], [0], [1], [0, 0, 1, 1], [], []>} : vector<8x512xbf16>, vector<512x128xbf16>, vector<8x128xf32> -> vector<8x128xf32>
    %c0_24 = arith.constant 0 : index
    %c0_25 = arith.constant 0 : index
    %41 = vector.load %arg9[%c0_24, %c0_25] : memref<1x128xf32, #tpu.memory_space<vmem>>, vector<1x128xf32>
    %42 = vector.broadcast %41 : vector<1x128xf32> to vector<8x128xf32>
    %43 = arith.addf %40, %42 : vector<8x128xf32>
    %c0_26 = arith.constant 0 : index
    %c0_27 = arith.constant 0 : index
    %44 = vector.load %arg10[%c0_26, %c0_27] : memref<8x128xf32, #tpu.memory_space<vmem>>, vector<8x128xf32>
    tpu.vector_store %arg10[%c0_26, %c0_27], %43 {strides = array<i32>} : memref<8x128xf32, #tpu.memory_space<vmem>>, vector<8x128xf32>,
    return
  }
  func.func @transform_0(%arg0: i32) -> (i32, i32) {
    %c0_i32 = arith.constant 0 : i32
    %c0_i32_0 = arith.constant 0 : i32
    return %arg0, %c0_i32 : i32, i32
  }
  func.func @transform_1(%arg0: i32) -> (i32, i32) {
    %c0_i32 = arith.constant 0 : i32
    %c0_i32_0 = arith.constant 0 : i32
    return %arg0, %c0_i32 : i32, i32
  }
  func.func @transform_2(%arg0: i32) -> (i32, i32) {
    %c0_i32 = arith.constant 0 : i32
    %c0_i32_0 = arith.constant 0 : i32
    %c0_i32_1 = arith.constant 0 : i32
    return %c0_i32, %c0_i32_0 : i32, i32
  }
  func.func @transform_3(%arg0: i32) -> (i32, i32) {
    %c0_i32 = arith.constant 0 : i32
    %c0_i32_0 = arith.constant 0 : i32
    %c0_i32_1 = arith.constant 0 : i32
    return %c0_i32, %c0_i32_0 : i32, i32
  }
  func.func @transform_4(%arg0: i32) -> (i32, i32) {
    %c0_i32 = arith.constant 0 : i32
    %c0_i32_0 = arith.constant 0 : i32
    %c0_i32_1 = arith.constant 0 : i32
    return %c0_i32, %c0_i32_0 : i32, i32
  }
  func.func @transform_5(%arg0: i32) -> (i32, i32) {
    %c0_i32 = arith.constant 0 : i32
    %c0_i32_0 = arith.constant 0 : i32
    %c0_i32_1 = arith.constant 0 : i32
    return %c0_i32, %c0_i32_0 : i32, i32
  }
  func.func @transform_6(%arg0: i32) -> (i32, i32) {
    %c0_i32 = arith.constant 0 : i32
    %c0_i32_0 = arith.constant 0 : i32
    %c0_i32_1 = arith.constant 0 : i32
    return %c0_i32, %c0_i32_0 : i32, i32
  }
  func.func @transform_7(%arg0: i32) -> (i32, i32) {
    %c0_i32 = arith.constant 0 : i32
    %c0_i32_0 = arith.constant 0 : i32
    %c0_i32_1 = arith.constant 0 : i32
    return %c0_i32, %c0_i32_0 : i32, i32
  }
  func.func @transform_8(%arg0: i32) -> (i32, i32) {
    %c0_i32 = arith.constant 0 : i32
    %c0_i32_0 = arith.constant 0 : i32
    %c0_i32_1 = arith.constant 0 : i32
    return %c0_i32, %c0_i32_0 : i32, i32
  }
  func.func @transform_9(%arg0: i32) -> (i32, i32) {
    %c0_i32 = arith.constant 0 : i32
    %c0_i32_0 = arith.constant 0 : i32
    return %arg0, %c0_i32 : i32, i32
  }
}

</mosaic_0001>

<bundles_post_ra>
// kernel: decoder_forward.1
= control target key start
LH: loop header
LB: loop body
LE: loop exit
PB: predicated region body
PF: predicated region fallthrough
CT: control target
= control target key end

     0   :  { %vm54_vm0 = vcmask 64512   ;;  %s3463_s0 = inlined_call_operand.vmem [shape: f32[8,16], index: 0, kind: input, shape index: {}]   ;;  %s3464_s1 = inlined_call_operand.vmem [shape: f32[8,8], index: 1, kind: input, shape index: {}]   ;;  %s3465_s2 = inlined_call_operand.vmem [shape: bf16[16,512], index: 2, kind: input, shape index: {}]   ;;  %s3466_s3 = inlined_call_operand.vmem [shape: bf16[8,512], index: 3, kind: input, shape index: {}]   ;;  %s3467_s4 = inlined_call_operand.vmem [shape: f32[1,512], index: 4, kind: input, shape index: {}]   ;;  %s3468_s5 = inlined_call_operand.vmem [shape: bf16[512,512], index: 5, kind: input, shape index: {}]   ;;  %s3469_s6 = inlined_call_operand.vmem [shape: f32[1,512], index: 6, kind: input, shape index: {}]   ;;  %s3470_s7 = inlined_call_operand.vmem [shape: bf16[512,128], index: 7, kind: input, shape index: {}]   ;;  %s3471_s8 = inlined_call_operand.vmem [shape: f32[1,128], index: 8, kind: input, shape index: {}]   ;;  %s3472_s9 = inlined_call_operand.hbm [shape: f32[8,128], index: 9, kind: output, shape index: {}]  }
   0x1   :  { %v2490_v0 = vld [vmem:[%s3464_s1] sm:$0xff] }
   0x2   :  { %v53_v1 = vmul.f32 %v2490_v0, %v2490_v0 }
   0x3   :  { %14 = vsyncpa [#allocation3], 0  ;;  %v2497_v2 = vld [vmem:[%s3463_s0] sm:$0xff]  ;;  %vm36_vm1 = vcmask 130048   ;;  %v77_v7 = vld [vmem:[%s3466_s3 + $0x8] sm:$0xff]  ;;  %vm91_vm2 = vcmask 1043456  }
   0x4   :  { %v55_v3 = vsel %vm54_vm0, %v53_v1, 0.0  ;;  %v35_v4 = vmul.f32 %v2497_v2, %v2497_v2  ;;  %v76_v6 = vld [vmem:[%s3466_s3] sm:$0xff]  ;;  %v82_v10 = vunpack.c.l.b16 %v77_v7  ;;  %v83_v11 = vunpack.c.h.b16 %v77_v7  ;;  %v1590_v20 = vld [vmem:[%s3465_s2 + $0x8] sm:$0xf]  ;;  %v2243_v21 = vld [vmem:[%s3465_s2 + $0x14] sm:$0xf0] }
   0x5   :  { %56 = vadd.xlane.f32.xlu0 %v55_v3  ;;  %v80_v8 = vunpack.c.l.b16 %v76_v6  ;;  %v81_v9 = vunpack.c.h.b16 %v76_v6  ;;  %v1582_v22 = vld [vmem:[%s3465_s2] sm:$0xf]  ;;  %v1591_v23 = vor.u32 %v2243_v21, %v1590_v20  ;;  %v2242_v24 = vld [vmem:[%s3465_s2 + $0xc] sm:$0xf0]  ;;  %v2240_v25 = vld [vmem:[%s3465_s2 + $0x4] sm:$0xf] }
   0x6   :  { %v37_v5 = vsel %vm36_vm1, %v35_v4, 0.0  ;;  %v86_v14 = vpack.c.b16 %v82_v10, %v82_v10  ;;  %v87_v15 = vpack.c.b16 %v83_v11, %v83_v11  ;;  %v1584_v26 = vld [vmem:[%s3465_s2 + $0x10] sm:$0xf0]  ;;  %v1583_v27 = vor.u32 %v2242_v24, %v1582_v22  ;;  %v2241_v29 = vld [vmem:[%s3465_s2 + $0xc] sm:$0xf]  ;;  %s2436_s19 = smov [#allocation2]  }
   0x7   :  { %v84_v12 = vpack.c.b16 %v80_v8, %v80_v8  ;;  %v85_v13 = vpack.c.b16 %v81_v9, %v81_v9  ;;  %v1587_v28 = vor.u32 %v2240_v25, %v1584_v26  ;;  %v1592_v30 = vld [vmem:[%s3465_s2 + $0x18] sm:$0xf0]  ;;  %v1714_v44 = vld [vmem:[%s3468_s5 + $0xe0] sm:$0xf]  ;;  %v2274_v45 = vld [vmem:[%s3468_s5 + $0xec] sm:$0xf0] }
   0x8   :  { %v99_v18 = vsel %vm91_vm2, %v86_v14, 0  ;;  %v102_v19 = vsel %vm91_vm2, %v87_v15, 0  ;;  %v1595_v31 = vor.u32 %v2241_v29, %v1592_v30  ;;  %v1842_v48 = vld [vmem:[%s3468_s5 + $0x1e0] sm:$0xf]  ;;  %v2306_v49 = vld [vmem:[%s3468_s5 + $0x1ec] sm:$0xf0]  ;;  %v1715_v57 = vor.u32 %v2274_v45, %v1714_v44 }
   0x9   :  { %v93_v16 = vsel %vm91_vm2, %v84_v12, 0  ;;  %v96_v17 = vsel %vm91_vm2, %v85_v13, 0  ;;  %137 = vmatpush.bf16.msra.mxu2 %v99_v18  ;;  %150 = vmatpush.bf16.msra.mxu3 %v102_v19  ;;  %v1970_v50 = vld [vmem:[%s3468_s5 + $0x2e0] sm:$0xf]  ;;  %v2338_v52 = vld [vmem:[%s3468_s5 + $0x2ec] sm:$0xf0]  ;;  %v1843_v58 = vor.u32 %v2306_v49, %v1842_v48 }
   0xa   :  { %111 = vmatpush.bf16.msra.mxu0 %v93_v16  ;;  %124 = vmatpush.bf16.msra.mxu1 %v96_v17  ;;  %v2098_v53 = vld [vmem:[%s3468_s5 + $0x3e0] sm:$0xf]  ;;  %v2370_v54 = vld [vmem:[%s3468_s5 + $0x3ec] sm:$0xf0]  ;;  %s1565_s20 = sshll.u32 %s2436_s19, 4  ;;  %s1567_s23 = sshll.u32 %s3472_s9, 4  ;;  %s1566_s20 = int_to_ptr.vmem [resolvable:$true] %s1565_s20  ;;  %s1568_s23 = int_to_ptr.hbm [resolvable:$true] %s1567_s23 }
   0xb   :  { %v1698_v59 = vld [vmem:[%s3468_s5 + $0xc0] sm:$0xf]  ;;  %v2270_v60 = vld [vmem:[%s3468_s5 + $0xcc] sm:$0xf0]  ;;  %v2099_v1 = vor.u32 %v2370_v54, %v2098_v53 }
   0xc   :  { %v1826_v61 = vld [vmem:[%s3468_s5 + $0x1c0] sm:$0xf]  ;;  %v2302_v63 = vld [vmem:[%s3468_s5 + $0x1cc] sm:$0xf0]  ;;  %v1699_v7 = vor.u32 %v2270_v60, %v1698_v59 }
   0xd   :  { %38 = vadd.xlane.f32.xlu0 %v37_v5  ;;  %212 = vmatpush.bf16.msrb.mxu2 %v1591_v23  ;;  %v1954_v3 = vld [vmem:[%s3468_s5 + $0x2c0] sm:$0xf]  ;;  %v2334_v4 = vld [vmem:[%s3468_s5 + $0x2cc] sm:$0xf0]  ;;  %v1827_v8 = vor.u32 %v2302_v63, %v1826_v61 }
   0xe   :  { %186 = vmatpush.bf16.msrb.mxu0 %v1583_v27  ;;  %199 = vmatpush.bf16.msrb.mxu1 %v1587_v28  ;;  %v2082_v5 = vld [vmem:[%s3468_s5 + $0x3c0] sm:$0xf]  ;;  %v2366_v6 = vld [vmem:[%s3468_s5 + $0x3cc] sm:$0xf0]  ;;  %v1955_v14 = vor.u32 %v2334_v4, %v1954_v3 }
   0xf   :  { %225 = vmatpush.bf16.msrb.mxu3 %v1595_v31  ;;  %v1682_v9 = vld [vmem:[%s3468_s5 + $0xa0] sm:$0xf]  ;;  %v2266_v10 = vld [vmem:[%s3468_s5 + $0xac] sm:$0xf0]  ;;  %v2083_v15 = vor.u32 %v2366_v6, %v2082_v5 }
  0x10   :  { %v1810_v12 = vld [vmem:[%s3468_s5 + $0x1a0] sm:$0xf]  ;;  %v2298_v13 = vld [vmem:[%s3468_s5 + $0x1ac] sm:$0xf0]  ;;  %v1683_v21 = vor.u32 %v2266_v10, %v1682_v9 }
  0x11   :  { %v1938_v16 = vld [vmem:[%s3468_s5 + $0x2a0] sm:$0xf]  ;;  %v2330_v17 = vld [vmem:[%s3468_s5 + $0x2ac] sm:$0xf0]  ;;  %v1811_v22 = vor.u32 %v2298_v13, %v1810_v12 }
  0x12   :  { %v2066_v18 = vld [vmem:[%s3468_s5 + $0x3a0] sm:$0xf]  ;;  %v2362_v19 = vld [vmem:[%s3468_s5 + $0x3ac] sm:$0xf0]  ;;  %v1939_v28 = vor.u32 %v2330_v17, %v1938_v16  ;;  %v1716_v17 = vld [vmem:[%s3468_s5 + $0xf0] sm:$0xf0] }
  0x13   :  { %v1666_v23 = vld [vmem:[%s3468_s5 + $0x80] sm:$0xf]  ;;  %v2262_v24 = vld [vmem:[%s3468_s5 + $0x8c] sm:$0xf0]  ;;  %v2067_v29 = vor.u32 %v2362_v19, %v2066_v18  ;;  %v2304_v18 = vld [vmem:[%s3468_s5 + $0x1e4] sm:$0xf] }
  0x14   :  { %v1794_v26 = vld [vmem:[%s3468_s5 + $0x180] sm:$0xf]  ;;  %v2294_v27 = vld [vmem:[%s3468_s5 + $0x18c] sm:$0xf0]  ;;  %v1844_v19 = vld [vmem:[%s3468_s5 + $0x1f0] sm:$0xf0] }
  0x15   :  { %v1922_v30 = vld [vmem:[%s3468_s5 + $0x280] sm:$0xf]  ;;  %v2326_v31 = vld [vmem:[%s3468_s5 + $0x28c] sm:$0xf0] }
  0x16   :  { %v2034_v44 = vld [vmem:[%s3468_s5 + $0x360] sm:$0xf]  ;;  %v2354_v45 = vld [vmem:[%s3468_s5 + $0x36c] sm:$0xf0] }
  0x17   :  { %v1634_v49 = vld [vmem:[%s3468_s5 + $0x40] sm:$0xf]  ;;  %v2035_v54 = vor.u32 %v2354_v45, %v2034_v44  ;;  %v2314_v5 = vld [vmem:[%s3468_s5 + $0x22c] sm:$0xf0]  ;;  %v1812_v45 = vld [vmem:[%s3468_s5 + $0x1b0] sm:$0xf0] }
  0x18   :  { %v1618_v61 = vld [vmem:[%s3468_s5 + $0x20] sm:$0xf]  ;;  %v2278_v13 = vld [vmem:[%s3468_s5 + $0x10c] sm:$0xf0] }
  0x19   :  { %v1746_v63 = vld [vmem:[%s3468_s5 + $0x120] sm:$0xf] }
  0x1a   :  { %v1874_v4 = vld [vmem:[%s3468_s5 + $0x220] sm:$0xf] }
  0x1b   :  { %v2002_v6 = vld [vmem:[%s3468_s5 + $0x320] sm:$0xf] }
  0x1c   :  { %v1602_v10 = vld [vmem:[%s3468_s5] sm:$0xf] }
  0x1d   :  { %v1730_v12 = vld [vmem:[%s3468_s5 + $0x100] sm:$0xf] }
  0x78   :  { %v57_v32 = vpop.xlane.xlu0 %56 }
  0x79   :  { %v58_v33 = vmax.f32 %v57_v32, 1e-24  ;;  %v2050_v32 = vld [vmem:[%s3468_s5 + $0x380] sm:$0xf] }
  0x7b   :  { %2406 = vrsqrt.f32 %v58_v33  ;;  %vm65_vm4 = vweird.f32 %v58_v33 }
  0x80   :  { %v39_v34 = vpop.xlane.xlu0 %38 }
  0x81   :  { %v2407_v35 = vpop.eup %2406  ;;  %v40_v36 = vmax.f32 %v39_v34, 1e-24 }
  0x82   :  { %v60_v37 = vmul.f32 %v2407_v35, %v58_v33  ;;  %vm66_vm3 = vweird.f32 %v2407_v35  ;;  %v2358_v33 = vld [vmem:[%s3468_s5 + $0x38c] sm:$0xf0] }
  0x83   :  { %2408 = vrsqrt.f32 %v40_v36  ;;  %vm67_vm5 = vmor %vm65_vm4, %vm66_vm3  ;;  %vm47_vm6 = vweird.f32 %v40_v36 }
  0x84   :  { %v61_v38 = vmul.f32 %v2407_v35, %v60_v37  ;;  %v1650_v37 = vld [vmem:[%s3468_s5 + $0x60] sm:$0xf] }
  0x86   :  { %v62_v39 = vmul.f32 0.5, %v61_v38  ;;  %v2258_v38 = vld [vmem:[%s3468_s5 + $0x6c] sm:$0xf0] }
  0x88   :  { %v63_v40 = vsub.f32 1.5, %v62_v39  ;;  %v1778_v39 = vld [vmem:[%s3468_s5 + $0x160] sm:$0xf] }
  0x89   :  { %v2533_v41 = vpop.eup %2408 }
  0x8a   :  { %v64_v42 = vmul.f32 %v2407_v35, %v63_v40  ;;  %v42_v43 = vmul.f32 %v2533_v41, %v40_v36  ;;  %vm48_vm7 = vweird.f32 %v2533_v41  ;;  %v1795_v36 = vor.u32 %v2294_v27, %v1794_v26  ;;  %v2300_v26 = vld [vmem:[%s3468_s5 + $0x1c4] sm:$0xf] }
  0x8b   :  { %vm2617_vm8 = vmor %vm47_vm6, %vm48_vm7  ;;  %v1923_v40 = vor.u32 %v2326_v31, %v1922_v30  ;;  %v2310_v30 = vld [vmem:[%s3468_s5 + $0x20c] sm:$0xf0] }
  0x8c   :  { %v68_v46 = vsel %vm67_vm5, %v2407_v35, %v64_v42  ;;  %v43_v47 = vmul.f32 %v2533_v41, %v42_v43  ;;  %v1667_v35 = vor.u32 %v2262_v24, %v1666_v23  ;;  %v1906_v42 = vld [vmem:[%s3468_s5 + $0x260] sm:$0xf]  ;;  %v2322_v43 = vld [vmem:[%s3468_s5 + $0x26c] sm:$0xf0]  ;;  %v1847_v23 = vor.u32 %v2304_v18, %v1844_v19  ;;  %v2268_v24 = vld [vmem:[%s3468_s5 + $0xc4] sm:$0xf] }
  0x8d   :  { %v69_v51 = vmul.f32 %v68_v46, %v2490_v0  ;;  %v1971_v0 = vor.u32 %v2338_v52, %v1970_v50  ;;  %v2254_v50 = vld [vmem:[%s3468_s5 + $0x4c] sm:$0xf0]  ;;  %v1907_v53 = vor.u32 %v2322_v43, %v1906_v42  ;;  %v1684_v42 = vld [vmem:[%s3468_s5 + $0xb0] sm:$0xf0]  ;;  %v2296_v43 = vld [vmem:[%s3468_s5 + $0x1a4] sm:$0xf] }
  0x8e   :  { %v44_v55 = vmul.f32 0.5, %v43_v47  ;;  %v1651_v47 = vor.u32 %v2258_v38, %v1650_v37  ;;  %v2286_v52 = vld [vmem:[%s3468_s5 + $0x14c] sm:$0xf0]  ;;  %v1635_v59 = vor.u32 %v2254_v50, %v1634_v49  ;;  %v1972_v37 = vld [vmem:[%s3468_s5 + $0x2f0] sm:$0xf0] }
  0x8f   :  { %v75_v56 = vpack.c.bf16 %v69_v51, %v69_v51  ;;  %v1762_v51 = vld [vmem:[%s3468_s5 + $0x140] sm:$0xf]  ;;  %v2368_v38 = vld [vmem:[%s3468_s5 + $0x3e4] sm:$0xf]  ;;  %v1764_v18 = vld [vmem:[%s3468_s5 + $0x150] sm:$0xf0] }
  0x90   :  { %v45_v62 = vsub.f32 1.5, %v44_v55  ;;  %v1890_v55 = vld [vmem:[%s3468_s5 + $0x240] sm:$0xf]  ;;  %v1763_v60 = vor.u32 %v2286_v52, %v1762_v51  ;;  %v2364_v49 = vld [vmem:[%s3468_s5 + $0x3c4] sm:$0xf] }
  0x91   :  { %1576 = vmatmul.msk.bf16.vlgmr.msra.gmra.mxu0 %vm54_vm0, %v75_v56  ;;  %1577 = vmatmul.msk.bf16.vlgmr.msra.gmra.mxu1 %vm54_vm0, %v75_v56  ;;  %v2084_v51 = vld [vmem:[%s3468_s5 + $0x3d0] sm:$0xf0] }
  0x92   :  { %1578 = vmatmul.msk.bf16.vlgmr.msra.gmra.mxu2 %vm54_vm0, %v75_v56  ;;  %1579 = vmatmul.msk.bf16.vlgmr.msra.gmra.mxu3 %vm54_vm0, %v75_v56  ;;  %v46_v11 = vmul.f32 %v2533_v41, %v45_v62  ;;  %v2318_v56 = vld [vmem:[%s3468_s5 + $0x24c] sm:$0xf0]  ;;  %v2087_v52 = vor.u32 %v2364_v49, %v2084_v51  ;;  %v2308_v49 = vld [vmem:[%s3468_s5 + $0x204] sm:$0xf] }
  0x93   :  { %1031 = vmatpush.bf16.msra.mxu0 %v1715_v57  ;;  %1044 = vmatpush.bf16.msra.mxu1 %v1843_v58  ;;  %v2018_v57 = vld [vmem:[%s3468_s5 + $0x340] sm:$0xf]  ;;  %v2350_v58 = vld [vmem:[%s3468_s5 + $0x34c] sm:$0xf0] }
  0x94   :  { %1057 = vmatpush.bf16.msra.mxu2 %v1971_v0  ;;  %1070 = vmatpush.bf16.msra.mxu3 %v2099_v1  ;;  %v50_v25 = vsel %vm2617_vm8, %v2533_v41, %v46_v11  ;;  %v2051_v41 = vor.u32 %v2358_v33, %v2050_v32  ;;  %v2250_v62 = vld [vmem:[%s3468_s5 + $0x2c] sm:$0xf0]  ;;  %v1891_v1 = vor.u32 %v2318_v56, %v1890_v55  ;;  %v1986_v33 = vld [vmem:[%s3468_s5 + $0x300] sm:$0xf]  ;;  %v2292_v55 = vld [vmem:[%s3468_s5 + $0x184] sm:$0xf] }
  0x95   :  { %v51_v34 = vmul.f32 %v50_v25, %v2497_v2  ;;  %v2290_v2 = vld [vmem:[%s3468_s5 + $0x16c] sm:$0xf0]  ;;  %v2019_v3 = vor.u32 %v2350_v58, %v2018_v57  ;;  %v1700_v25 = vld [vmem:[%s3468_s5 + $0xd0] sm:$0xf0] }
  0x96   :  { %v1779_v48 = vor.u32 %v2290_v2, %v1778_v39  ;;  %v2282_v0 = vld [vmem:[%s3468_s5 + $0x12c] sm:$0xf0]  ;;  %v1703_v27 = vor.u32 %v2268_v24, %v1700_v25  ;;  %v2100_v39 = vld [vmem:[%s3468_s5 + $0x3f0] sm:$0xf0] }
  0x97   :  { %1032 = vmatpush.bf16.msra.mxu0 %v1699_v7  ;;  %1045 = vmatpush.bf16.msra.mxu1 %v1827_v8  ;;  %v70_v46 = vpack.c.bf16 %v51_v34, %v51_v34  ;;  %v2346_v7 = vld [vmem:[%s3468_s5 + $0x32c] sm:$0xf0]  ;;  %v1619_v8 = vor.u32 %v2250_v62, %v1618_v61  ;;  %v1747_v9 = vor.u32 %v2282_v0, %v1746_v63  ;;  %v1796_v57 = vld [vmem:[%s3468_s5 + $0x190] sm:$0xf0]  ;;  %v2360_v61 = vld [vmem:[%s3468_s5 + $0x3a4] sm:$0xf] }
  0x98   :  { %1058 = vmatpush.bf16.msra.mxu2 %v1955_v14  ;;  %1071 = vmatpush.bf16.msra.mxu3 %v2083_v15  ;;  %v2246_v11 = vld [vmem:[%s3468_s5 + $0xc] sm:$0xf0]  ;;  %v2272_v14 = vld [vmem:[%s3468_s5 + $0xe4] sm:$0xf]  ;;  %v1875_v15 = vor.u32 %v2314_v5, %v1874_v4  ;;  %v2003_v16 = vor.u32 %v2346_v7, %v2002_v6  ;;  %v1799_v58 = vor.u32 %v2292_v55, %v1796_v57  ;;  %v2068_v63 = vld [vmem:[%s3468_s5 + $0x3b0] sm:$0xf0] }
  0x99   :  { %v1603_v20 = vor.u32 %v2246_v11, %v1602_v10  ;;  %v2342_v34 = vld [vmem:[%s3468_s5 + $0x30c] sm:$0xf0]  ;;  %v2256_v0 = vld [vmem:[%s3468_s5 + $0x64] sm:$0xf]  ;;  %v1780_v6 = vld [vmem:[%s3468_s5 + $0x170] sm:$0xf0] }
  0x9a   :  { %v2288_v5 = vld [vmem:[%s3468_s5 + $0x164] sm:$0xf]  ;;  %v2036_v24 = vld [vmem:[%s3468_s5 + $0x370] sm:$0xf0] }
  0x9b   :  { %1033 = vmatpush.bf16.msra.mxu0 %v1683_v21  ;;  %1046 = vmatpush.bf16.msra.mxu1 %v1811_v22  ;;  %v1731_v21 = vor.u32 %v2278_v13, %v1730_v12  ;;  %v1719_v22 = vor.u32 %v2272_v14, %v1716_v17  ;;  %v1783_v7 = vor.u32 %v2288_v5, %v1780_v6  ;;  %v2356_v10 = vld [vmem:[%s3468_s5 + $0x384] sm:$0xf]  ;;  %v2052_v12 = vld [vmem:[%s3468_s5 + $0x390] sm:$0xf0] }
  0x9c   :  { %1059 = vmatpush.bf16.msra.mxu2 %v1939_v28  ;;  %1072 = vmatpush.bf16.msra.mxu3 %v2067_v29  ;;  %v1828_v28 = vld [vmem:[%s3468_s5 + $0x1d0] sm:$0xf0]  ;;  %v1858_v29 = vld [vmem:[%s3468_s5 + $0x200] sm:$0xf]  ;;  %v2055_v13 = vor.u32 %v2356_v10, %v2052_v12  ;;  %v2252_v14 = vld [vmem:[%s3468_s5 + $0x44] sm:$0xf] }
  0x9d   :  { %v1831_v31 = vor.u32 %v2300_v26, %v1828_v28  ;;  %v1859_v32 = vor.u32 %v2310_v30, %v1858_v29  ;;  %v2248_v26 = vld [vmem:[%s3468_s5 + $0x24] sm:$0xf]  ;;  %v1748_v30 = vld [vmem:[%s3468_s5 + $0x130] sm:$0xf0]  ;;  %v2275_v10 = vld [vmem:[%s3468_s5 + $0xf4] sm:$0xf0] }
  0x9e   :  { %v2280_v29 = vld [vmem:[%s3468_s5 + $0x124] sm:$0xf]  ;;  %v2307_v12 = vld [vmem:[%s3468_s5 + $0x1f4] sm:$0xf0] }
  0x9f   :  { %1034 = vmatpush.bf16.msra.mxu0 %v1667_v35  ;;  %1047 = vmatpush.bf16.msra.mxu1 %v1795_v36  ;;  %v2336_v35 = vld [vmem:[%s3468_s5 + $0x2e4] sm:$0xf]  ;;  %v1987_v36 = vor.u32 %v2342_v34, %v1986_v33  ;;  %v1892_v33 = vld [vmem:[%s3468_s5 + $0x250] sm:$0xf0] }
  0xa0   :  { %1060 = vmatpush.bf16.msra.mxu2 %v1923_v40  ;;  %1073 = vmatpush.bf16.msra.mxu3 %v2051_v41  ;;  %v1975_v2 = vor.u32 %v2336_v35, %v1972_v37  ;;  %v2103_v40 = vor.u32 %v2368_v38, %v2100_v39  ;;  %v2264_v41 = vld [vmem:[%s3468_s5 + $0xa4] sm:$0xf]  ;;  %v1604_v39 = vld [vmem:[%s3468_s5 + $0x10] sm:$0xf0] }
  0xa1   :  { %1596 = vmatmul.msk.bf16.vlgmr.msrb.gmra.mxu0 %vm36_vm1, %v70_v46  ;;  %1597 = vmatmul.msk.bf16.vlgmr.msrb.gmra.mxu1 %vm36_vm1, %v70_v46  ;;  %v1687_v44 = vor.u32 %v2264_v41, %v1684_v42  ;;  %v2348_v34 = vld [vmem:[%s3468_s5 + $0x344] sm:$0xf]  ;;  %v1732_v41 = vld [vmem:[%s3468_s5 + $0x110] sm:$0xf0] }
  0xa2   :  { %1598 = vmatmul.msk.bf16.vlgmr.msrb.gmra.mxu2 %vm36_vm1, %v70_v46  ;;  %1599 = vmatmul.msk.bf16.vlgmr.msrb.gmra.mxu3 %vm36_vm1, %v70_v46  ;;  %v1815_v46 = vor.u32 %v2296_v43, %v1812_v45  ;;  %v2244_v38 = vld [vmem:[%s3468_s5 + $0x4] sm:$0xf] }
  0xa3   :  { %1035 = vmatpush.bf16.msra.mxu0 %v1651_v47  ;;  %1048 = vmatpush.bf16.msra.mxu1 %v1779_v48  ;;  %v2332_v47 = vld [vmem:[%s3468_s5 + $0x2c4] sm:$0xf]  ;;  %v1956_v48 = vld [vmem:[%s3468_s5 + $0x2d0] sm:$0xf0] }
  0xa4   :  { %1061 = vmatpush.bf16.msra.mxu2 %v1907_v53  ;;  %1074 = vmatpush.bf16.msra.mxu3 %v2035_v54  ;;  %v1959_v50 = vor.u32 %v2332_v47, %v1956_v48  ;;  %v2260_v53 = vld [vmem:[%s3468_s5 + $0x84] sm:$0xf]  ;;  %v1668_v54 = vld [vmem:[%s3468_s5 + $0x90] sm:$0xf0] }
  0xa5   :  { %v1671_v56 = vor.u32 %v2260_v53, %v1668_v54  ;;  %v2312_v43 = vld [vmem:[%s3468_s5 + $0x224] sm:$0xf]  ;;  %v2004_v47 = vld [vmem:[%s3468_s5 + $0x330] sm:$0xf0] }
  0xa6   :  { %v2344_v45 = vld [vmem:[%s3468_s5 + $0x324] sm:$0xf]  ;;  %v1988_v53 = vld [vmem:[%s3468_s5 + $0x310] sm:$0xf0] }
  0xa7   :  { %1036 = vmatpush.bf16.msra.mxu0 %v1635_v59  ;;  %1049 = vmatpush.bf16.msra.mxu1 %v1763_v60  ;;  %v2328_v59 = vld [vmem:[%s3468_s5 + $0x2a4] sm:$0xf]  ;;  %v1940_v60 = vld [vmem:[%s3468_s5 + $0x2b0] sm:$0xf0]  ;;  %v2007_v48 = vor.u32 %v2344_v45, %v2004_v47  ;;  %v1962_v47 = vld [vmem:[%s3468_s5 + $0x2c8] sm:$0xf] }
  0xa8   :  { %1062 = vmatpush.bf16.msra.mxu2 %v1891_v1  ;;  %1075 = vmatpush.bf16.msra.mxu3 %v2019_v3  ;;  %v1943_v62 = vor.u32 %v2328_v59, %v1940_v60  ;;  %v1652_v1 = vld [vmem:[%s3468_s5 + $0x70] sm:$0xf0]  ;;  %v2071_v3 = vor.u32 %v2360_v61, %v2068_v63  ;;  %v231_v61 = vld [vmem:[%s3467_s4] sm:$0xf] }
  0xa9   :  { %v1655_v4 = vor.u32 %v2256_v0, %v1652_v1  ;;  %v233_v0 = vperm.slane %v231_v61, 0  ;;  %v234_v1 = vperm.slane %v231_v61, 1 }
  0xab   :  { %1037 = vmatpush.bf16.msra.mxu0 %v1619_v8  ;;  %1050 = vmatpush.bf16.msra.mxu1 %v1747_v9  ;;  %v2324_v8 = vld [vmem:[%s3468_s5 + $0x284] sm:$0xf]  ;;  %v1924_v9 = vld [vmem:[%s3468_s5 + $0x290] sm:$0xf0] }
  0xac   :  { %1063 = vmatpush.bf16.msra.mxu2 %v1875_v15  ;;  %1076 = vmatpush.bf16.msra.mxu3 %v2003_v16  ;;  %v1927_v11 = vor.u32 %v2324_v8, %v1924_v9  ;;  %v1636_v15 = vld [vmem:[%s3468_s5 + $0x50] sm:$0xf0]  ;;  %v2284_v16 = vld [vmem:[%s3468_s5 + $0x144] sm:$0xf] }
  0xad   :  { %v1639_v17 = vor.u32 %v2252_v14, %v1636_v15  ;;  %v1767_v19 = vor.u32 %v2284_v16, %v1764_v18  ;;  %v235_v15 = vperm.slane %v231_v61, 2  ;;  %v236_v16 = vperm.slane %v231_v61, 3 }
  0xaf   :  { %1038 = vmatpush.bf16.msra.mxu0 %v1603_v20  ;;  %1051 = vmatpush.bf16.msra.mxu1 %v1731_v21  ;;  %v2320_v20 = vld [vmem:[%s3468_s5 + $0x264] sm:$0xf]  ;;  %v1908_v21 = vld [vmem:[%s3468_s5 + $0x270] sm:$0xf0] }
  0xb0   :  { %1064 = vmatpush.bf16.msra.mxu2 %v1859_v32  ;;  %1077 = vmatpush.bf16.msra.mxu3 %v1987_v36  ;;  %v2316_v32 = vld [vmem:[%s3468_s5 + $0x244] sm:$0xf]  ;;  %v2020_v36 = vld [vmem:[%s3468_s5 + $0x350] sm:$0xf0] }
  0xb1   :  { %v1895_v35 = vor.u32 %v2316_v32, %v1892_v33  ;;  %v2023_v37 = vor.u32 %v2348_v34, %v2020_v36  ;;  %v1978_v32 = vld [vmem:[%s3468_s5 + $0x2e8] sm:$0xf]  ;;  %v2339_v33 = vld [vmem:[%s3468_s5 + $0x2f4] sm:$0xf0] }
  0xb2   :  { %v2106_v34 = vld [vmem:[%s3468_s5 + $0x3e8] sm:$0xf] }
  0xb3   :  { %1083 = vmatpush.bf16.msrb.mxu0 %v1719_v22  ;;  %1096 = vmatpush.bf16.msrb.mxu1 %v1847_v23  ;;  %v2352_v22 = vld [vmem:[%s3468_s5 + $0x364] sm:$0xf]  ;;  %v1911_v23 = vor.u32 %v2320_v20, %v1908_v21  ;;  %v2271_v20 = vld [vmem:[%s3468_s5 + $0xd4] sm:$0xf0] }
  0xb4   :  { %1109 = vmatpush.bf16.msrb.mxu2 %v1975_v2  ;;  %1122 = vmatpush.bf16.msrb.mxu3 %v2103_v40  ;;  %v2039_v25 = vor.u32 %v2352_v22, %v2036_v24  ;;  %v2276_v2 = vld [vmem:[%s3468_s5 + $0x104] sm:$0xf]  ;;  %v1607_v40 = vor.u32 %v2244_v38, %v1604_v39  ;;  %v2371_v38 = vld [vmem:[%s3468_s5 + $0x3f4] sm:$0xf0]  ;;  %v1690_v39 = vld [vmem:[%s3468_s5 + $0xa8] sm:$0xf] }
  0xb5   :  { %v1735_v42 = vor.u32 %v2276_v2, %v1732_v41  ;;  %v2267_v2 = vld [vmem:[%s3468_s5 + $0xb4] sm:$0xf0]  ;;  %v2107_v45 = vor.u32 %v2371_v38, %v2106_v34 }
  0xb6   :  { %v2299_v41 = vld [vmem:[%s3468_s5 + $0x1b4] sm:$0xf0] }
  0xb7   :  { %1084 = vmatpush.bf16.msrb.mxu0 %v1703_v27  ;;  %1097 = vmatpush.bf16.msrb.mxu1 %v1831_v31  ;;  %v1620_v27 = vld [vmem:[%s3468_s5 + $0x30] sm:$0xf0]  ;;  %v1751_v31 = vor.u32 %v2280_v29, %v1748_v30  ;;  %v2283_v34 = vld [vmem:[%s3468_s5 + $0x134] sm:$0xf0] }
  0xb8   :  { %1110 = vmatpush.bf16.msrb.mxu2 %v1959_v50  ;;  %1123 = vmatpush.bf16.msrb.mxu3 %v2087_v52  ;;  %v1623_v28 = vor.u32 %v2248_v26, %v1620_v27  ;;  %v1860_v50 = vld [vmem:[%s3468_s5 + $0x210] sm:$0xf0]  ;;  %v2340_v52 = vld [vmem:[%s3468_s5 + $0x304] sm:$0xf]  ;;  %v2303_v26 = vld [vmem:[%s3468_s5 + $0x1d4] sm:$0xf0] }
  0xb9   :  { %v1863_v51 = vor.u32 %v2308_v49, %v1860_v50  ;;  %v1991_v54 = vor.u32 %v2340_v52, %v1988_v53  ;;  %v2090_v52 = vld [vmem:[%s3468_s5 + $0x3c8] sm:$0xf]  ;;  %v2367_v53 = vld [vmem:[%s3468_s5 + $0x3d4] sm:$0xf0] }
  0xba   :  { %v2091_v61 = vor.u32 %v2367_v53, %v2090_v52  ;;  %v2319_v38 = vld [vmem:[%s3468_s5 + $0x254] sm:$0xf0]  ;;  %v2305_v52 = vld [vmem:[%s3468_s5 + $0x1ec] sm:$0xf]  ;;  %v1852_v53 = vld [vmem:[%s3468_s5 + $0x1f8] sm:$0xf0] }
  0xbb   :  { %1085 = vmatpush.bf16.msrb.mxu0 %v1687_v44  ;;  %1098 = vmatpush.bf16.msrb.mxu1 %v1815_v46  ;;  %v1876_v44 = vld [vmem:[%s3468_s5 + $0x230] sm:$0xf0] }
  0xbc   :  { %1111 = vmatpush.bf16.msrb.mxu2 %v1943_v62  ;;  %1124 = vmatpush.bf16.msrb.mxu3 %v2071_v3  ;;  %v1879_v46 = vor.u32 %v2312_v43, %v1876_v44  ;;  %v1979_v44 = vor.u32 %v2339_v33, %v1978_v32  ;;  %v2251_v32 = vld [vmem:[%s3468_s5 + $0x34] sm:$0xf0]  ;;  %v1754_v33 = vld [vmem:[%s3468_s5 + $0x128] sm:$0xf] }
  0xbf   :  { %1086 = vmatpush.bf16.msrb.mxu0 %v1671_v56  ;;  %1099 = vmatpush.bf16.msrb.mxu1 %v1799_v58 }
  0xc0   :  { %1112 = vmatpush.bf16.msrb.mxu2 %v1927_v11  ;;  %1125 = vmatpush.bf16.msrb.mxu3 %v2055_v13  ;;  %v1850_v11 = vld [vmem:[%s3468_s5 + $0x1e8] sm:$0xf] }
  0xc1   :  { %v1851_v18 = vor.u32 %v2307_v12, %v1850_v11  ;;  %v1930_v11 = vld [vmem:[%s3468_s5 + $0x288] sm:$0xf]  ;;  %v2327_v12 = vld [vmem:[%s3468_s5 + $0x294] sm:$0xf0] }
  0xc3   :  { %1087 = vmatpush.bf16.msrb.mxu0 %v1655_v4  ;;  %1100 = vmatpush.bf16.msrb.mxu1 %v1783_v7  ;;  %v1722_v7 = vld [vmem:[%s3468_s5 + $0xe8] sm:$0xf] }
  0xc4   :  { %1113 = vmatpush.bf16.msrb.mxu2 %v1911_v23  ;;  %1126 = vmatpush.bf16.msrb.mxu3 %v2039_v25  ;;  %v1834_v25 = vld [vmem:[%s3468_s5 + $0x1c8] sm:$0xf] }
  0xc7   :  { %1088 = vmatpush.bf16.msrb.mxu0 %v1639_v17  ;;  %1101 = vmatpush.bf16.msrb.mxu1 %v1767_v19  ;;  %v1723_v17 = vor.u32 %v2275_v10, %v1722_v7  ;;  %v1706_v19 = vld [vmem:[%s3468_s5 + $0xc8] sm:$0xf] }
  0xc8   :  { %1114 = vmatpush.bf16.msrb.mxu2 %v1895_v35  ;;  %1127 = vmatpush.bf16.msrb.mxu3 %v2023_v37  ;;  %v1835_v37 = vor.u32 %v2303_v26, %v1834_v25  ;;  %v1786_v7 = vld [vmem:[%s3468_s5 + $0x168] sm:$0xf]  ;;  %v2323_v26 = vld [vmem:[%s3468_s5 + $0x274] sm:$0xf0] }
  0xc9   :  { %v1914_v25 = vld [vmem:[%s3468_s5 + $0x268] sm:$0xf] }
  0xcb   :  { %1089 = vmatpush.bf16.msrb.mxu0 %v1623_v28  ;;  %1102 = vmatpush.bf16.msrb.mxu1 %v1751_v31  ;;  %v1707_v31 = vor.u32 %v2271_v20, %v1706_v19  ;;  %v1770_v19 = vld [vmem:[%s3468_s5 + $0x148] sm:$0xf]  ;;  %v2287_v20 = vld [vmem:[%s3468_s5 + $0x154] sm:$0xf0] }
  0xcc   :  { %1115 = vmatpush.bf16.msrb.mxu2 %v1879_v46  ;;  %1128 = vmatpush.bf16.msrb.mxu3 %v2007_v48  ;;  %v1691_v46 = vor.u32 %v2267_v2, %v1690_v39  ;;  %v2335_v48 = vld [vmem:[%s3468_s5 + $0x2d4] sm:$0xf0]  ;;  %v2026_v39 = vld [vmem:[%s3468_s5 + $0x348] sm:$0xf] }
  0xcd   :  { %v2351_v2 = vld [vmem:[%s3468_s5 + $0x354] sm:$0xf0] }
  0xcf   :  { %1090 = vmatpush.bf16.msrb.mxu0 %v1607_v40  ;;  %1103 = vmatpush.bf16.msrb.mxu1 %v1735_v42  ;;  %v1818_v40 = vld [vmem:[%s3468_s5 + $0x1a8] sm:$0xf] }
  0xd0   :  { %1116 = vmatpush.bf16.msrb.mxu2 %v1863_v51  ;;  %1129 = vmatpush.bf16.msrb.mxu3 %v1991_v54  ;;  %v1819_v51 = vor.u32 %v2299_v41, %v1818_v40  ;;  %v1674_v54 = vld [vmem:[%s3468_s5 + $0x88] sm:$0xf]  ;;  %v1755_v41 = vor.u32 %v2283_v34, %v1754_v33  ;;  %v2293_v33 = vld [vmem:[%s3468_s5 + $0x18c] sm:$0xf]  ;;  %v1804_v34 = vld [vmem:[%s3468_s5 + $0x198] sm:$0xf0] }
 0x10e   :  { %v113_v55 = vpop.f32.mrf.mxu0  ;;  %v126_v56 = vpop.f32.mrf.mxu1 }
 0x115   :  { %v139_v57 = vpop.f32.mrf.mxu2  ;;  %v152_v58 = vpop.f32.mrf.mxu3 }
 0x116   :  { %v115_v59 = vpop.f32.mrf.mxu0  ;;  %v128_v60 = vpop.f32.mrf.mxu1 }
 0x117   :  { %v2295_v59 = vld [vmem:[%s3468_s5 + $0x194] sm:$0xf0]  ;;  %v1963_v60 = vor.u32 %v2335_v48, %v1962_v47  ;;  %v1724_v47 = vld [vmem:[%s3468_s5 + $0xf8] sm:$0xf0] }
 0x11d   :  { %v141_v62 = vpop.f32.mrf.mxu2  ;;  %v154_v63 = vpop.f32.mrf.mxu3 }
 0x11e   :  { %v188_v3 = vpop.f32.mrf.mxu0  ;;  %v201_v4 = vpop.f32.mrf.mxu1  ;;  %v1946_v62 = vld [vmem:[%s3468_s5 + $0x2a8] sm:$0xf] }
 0x11f   :  { %v189_v5 = vadd.f32 %v188_v3, %v113_v55  ;;  %v202_v6 = vadd.f32 %v201_v4, %v126_v56  ;;  %v2074_v3 = vld [vmem:[%s3468_s5 + $0x3a8] sm:$0xf]  ;;  %v2363_v4 = vld [vmem:[%s3468_s5 + $0x3b4] sm:$0xf0] }
 0x120   :  { %v2075_v10 = vor.u32 %v2363_v4, %v2074_v3  ;;  %v1836_v4 = vld [vmem:[%s3468_s5 + $0x1d8] sm:$0xf0] }
 0x121   :  { %v241_v8 = vadd.f32 %v233_v0, %v189_v5  ;;  %v242_v9 = vadd.f32 %v234_v1, %v202_v6  ;;  %v2331_v1 = vld [vmem:[%s3468_s5 + $0x2b4] sm:$0xf0]  ;;  %v1658_v5 = vld [vmem:[%s3468_s5 + $0x68] sm:$0xf] }
 0x122   :  { %v2259_v6 = vld [vmem:[%s3468_s5 + $0x74] sm:$0xf0] }
 0x123   :  { %v245_v13 = vmax.f32 %v241_v8, 0.0  ;;  %v246_v14 = vmax.f32 %v242_v9, 0.0  ;;  %v2291_v8 = vld [vmem:[%s3468_s5 + $0x174] sm:$0xf0]  ;;  %v1947_v9 = vor.u32 %v2331_v1, %v1946_v62  ;;  %v2269_v62 = vld [vmem:[%s3468_s5 + $0xcc] sm:$0xf] }
 0x125   :  { %v2962_v21 = vpack.c.bf16 %v245_v13, %v245_v13  ;;  %v2964_v22 = vpack.c.bf16 %v246_v14, %v246_v14  ;;  %v214_v23 = vpop.f32.mrf.mxu2  ;;  %v227_v24 = vpop.f32.mrf.mxu3  ;;  %v2058_v13 = vld [vmem:[%s3468_s5 + $0x388] sm:$0xf]  ;;  %v2359_v14 = vld [vmem:[%s3468_s5 + $0x394] sm:$0xf0] }
 0x126   :  { %v215_v27 = vadd.f32 %v214_v23, %v139_v57  ;;  %v228_v28 = vadd.f32 %v227_v24, %v152_v58  ;;  %v190_v29 = vpop.f32.mrf.mxu0  ;;  %v203_v30 = vpop.f32.mrf.mxu1  ;;  %v2263_v57 = vld [vmem:[%s3468_s5 + $0x94] sm:$0xf0]  ;;  %v1802_v58 = vld [vmem:[%s3468_s5 + $0x188] sm:$0xf]  ;;  %v1931_v23 = vor.u32 %v2327_v12, %v1930_v11  ;;  %v2059_v24 = vor.u32 %v2359_v14, %v2058_v13  ;;  %v2369_v11 = vld [vmem:[%s3468_s5 + $0x3ec] sm:$0xf] }
 0x127   :  { %1039 = vmatmul.bf16.vlgmr.msra.gmra.mxu0 %v2962_v21  ;;  %1052 = vmatmul.bf16.vlgmr.msra.gmra.mxu1 %v2964_v22  ;;  %v1675_v63 = vor.u32 %v2263_v57, %v1674_v54  ;;  %v1803_v0 = vor.u32 %v2295_v59, %v1802_v58  ;;  %v1771_v30 = vor.u32 %v2287_v20, %v1770_v19  ;;  %v1882_v54 = vld [vmem:[%s3468_s5 + $0x228] sm:$0xf]  ;;  %v2347_v57 = vld [vmem:[%s3468_s5 + $0x334] sm:$0xf0]  ;;  %v2108_v12 = vld [vmem:[%s3468_s5 + $0x3f8] sm:$0xf0] }
 0x128   :  { %v243_v35 = vadd.f32 %v235_v15, %v215_v27  ;;  %v244_v36 = vadd.f32 %v236_v16, %v228_v28  ;;  %1135 = vmatpush.bf16.msra.mxu0 %v1723_v17  ;;  %1148 = vmatpush.bf16.msra.mxu1 %v1851_v18  ;;  %v1659_v15 = vor.u32 %v2259_v6, %v1658_v5  ;;  %v1642_v17 = vld [vmem:[%s3468_s5 + $0x48] sm:$0xf]  ;;  %v2255_v18 = vld [vmem:[%s3468_s5 + $0x54] sm:$0xf0]  ;;  %v2297_v19 = vld [vmem:[%s3468_s5 + $0x1ac] sm:$0xf] }
 0x129   :  { %v1787_v16 = vor.u32 %v2291_v8, %v1786_v7  ;;  %v2042_v27 = vld [vmem:[%s3468_s5 + $0x368] sm:$0xf]  ;;  %v2355_v28 = vld [vmem:[%s3468_s5 + $0x374] sm:$0xf0]  ;;  %v1643_v29 = vor.u32 %v2255_v18, %v1642_v17  ;;  %v1692_v18 = vld [vmem:[%s3468_s5 + $0xb8] sm:$0xf0] }
 0x12a   :  { %v247_v42 = vmax.f32 %v243_v35, 0.0  ;;  %v248_v43 = vmax.f32 %v244_v36, 0.0  ;;  %v1915_v35 = vor.u32 %v2323_v26, %v1914_v25  ;;  %v2043_v36 = vor.u32 %v2355_v28, %v2042_v27  ;;  %v1866_v5 = vld [vmem:[%s3468_s5 + $0x208] sm:$0xf]  ;;  %v2311_v6 = vld [vmem:[%s3468_s5 + $0x214] sm:$0xf0] }
 0x12b   :  { %v1994_v7 = vld [vmem:[%s3468_s5 + $0x308] sm:$0xf]  ;;  %v2343_v8 = vld [vmem:[%s3468_s5 + $0x314] sm:$0xf0]  ;;  %v1820_v20 = vld [vmem:[%s3468_s5 + $0x1b8] sm:$0xf0] }
 0x12c   :  { %v3004_v49 = vpack.c.bf16 %v247_v42, %v247_v42  ;;  %v3006_v50 = vpack.c.bf16 %v248_v43, %v248_v43  ;;  %1136 = vmatpush.bf16.msra.mxu0 %v1707_v31  ;;  %1149 = vmatpush.bf16.msra.mxu1 %v1835_v37  ;;  %v1626_v31 = vld [vmem:[%s3468_s5 + $0x28] sm:$0xf]  ;;  %v2247_v43 = vld [vmem:[%s3468_s5 + $0x14] sm:$0xf0]  ;;  %v1995_v17 = vor.u32 %v2343_v8, %v1994_v7  ;;  %v2333_v25 = vld [vmem:[%s3468_s5 + $0x2cc] sm:$0xf] }
 0x12d   :  { %v216_v55 = vpop.f32.mrf.mxu2  ;;  %v229_v56 = vpop.f32.mrf.mxu3  ;;  %v1898_v37 = vld [vmem:[%s3468_s5 + $0x248] sm:$0xf]  ;;  %v1627_v40 = vor.u32 %v2251_v32, %v1626_v31  ;;  %v1964_v26 = vld [vmem:[%s3468_s5 + $0x2d8] sm:$0xf0]  ;;  %v2365_v27 = vld [vmem:[%s3468_s5 + $0x3cc] sm:$0xf] }
 0x12e   :  { %1065 = vmatmul.bf16.vlgmr.msra.gmra.mxu2 %v3004_v49  ;;  %1078 = vmatmul.bf16.vlgmr.msra.gmra.mxu3 %v3006_v50  ;;  %v1610_v42 = vld [vmem:[%s3468_s5 + $0x8] sm:$0xf]  ;;  %v1899_v48 = vor.u32 %v2319_v38, %v1898_v37  ;;  %v2315_v55 = vld [vmem:[%s3468_s5 + $0x234] sm:$0xf0]  ;;  %v2092_v28 = vld [vmem:[%s3468_s5 + $0x3d8] sm:$0xf0] }
 0x12f   :  { %1161 = vmatpush.bf16.msra.mxu2 %v1979_v44  ;;  %1174 = vmatpush.bf16.msra.mxu3 %v2107_v45  ;;  %v1738_v44 = vld [vmem:[%s3468_s5 + $0x108] sm:$0xf]  ;;  %v2279_v45 = vld [vmem:[%s3468_s5 + $0x114] sm:$0xf0]  ;;  %v1611_v58 = vor.u32 %v2247_v43, %v1610_v42  ;;  %v1883_v1 = vor.u32 %v2315_v55, %v1882_v54  ;;  %v2261_v31 = vld [vmem:[%s3468_s5 + $0x8c] sm:$0xf] }
 0x130   :  { %1137 = vmatpush.bf16.msra.mxu0 %v1691_v46  ;;  %1150 = vmatpush.bf16.msra.mxu1 %v1819_v51  ;;  %v2273_v46 = vld [vmem:[%s3468_s5 + $0xec] sm:$0xf]  ;;  %v2027_v51 = vor.u32 %v2351_v2, %v2026_v39  ;;  %v2010_v56 = vld [vmem:[%s3468_s5 + $0x328] sm:$0xf]  ;;  %v1739_v59 = vor.u32 %v2279_v45, %v1738_v44  ;;  %v1676_v32 = vld [vmem:[%s3468_s5 + $0x98] sm:$0xf0] }
 0x131   :  { %v2011_v3 = vor.u32 %v2347_v57, %v2010_v56  ;;  %v2329_v37 = vld [vmem:[%s3468_s5 + $0x2ac] sm:$0xf]  ;;  %v1948_v38 = vld [vmem:[%s3468_s5 + $0x2b8] sm:$0xf0] }
 0x132   :  { %v2361_v39 = vld [vmem:[%s3468_s5 + $0x3ac] sm:$0xf]  ;;  %v2076_v2 = vld [vmem:[%s3468_s5 + $0x3b8] sm:$0xf0] }
 0x133   :  { %1162 = vmatpush.bf16.msra.mxu2 %v1963_v60  ;;  %1175 = vmatpush.bf16.msra.mxu3 %v2091_v61  ;;  %v1727_v60 = vor.u32 %v2273_v46, %v1724_v47  ;;  %v1855_v61 = vor.u32 %v2305_v52, %v1852_v53  ;;  %v2257_v42 = vld [vmem:[%s3468_s5 + $0x6c] sm:$0xf]  ;;  %v1660_v43 = vld [vmem:[%s3468_s5 + $0x78] sm:$0xf0]  ;;  %v1951_v46 = vor.u32 %v2329_v37, %v1948_v38  ;;  %v2378_v38 = vld [vmem:[%s3470_s7 + $0x30] sm:$0xff] }
 0x134   :  { %1138 = vmatpush.bf16.msra.mxu0 %v1675_v63  ;;  %1151 = vmatpush.bf16.msra.mxu1 %v1803_v0  ;;  %v1708_v63 = vld [vmem:[%s3468_s5 + $0xd8] sm:$0xf0]  ;;  %v2301_v0 = vld [vmem:[%s3468_s5 + $0x1cc] sm:$0xf]  ;;  %v2079_v47 = vor.u32 %v2361_v39, %v2076_v2  ;;  %v1663_v54 = vor.u32 %v2257_v42, %v1660_v43 }
 0x135   :  { %v1711_v13 = vor.u32 %v2269_v62, %v1708_v63  ;;  %v1839_v14 = vor.u32 %v2301_v0, %v1836_v4  ;;  %v2289_v44 = vld [vmem:[%s3468_s5 + $0x16c] sm:$0xf]  ;;  %v1788_v45 = vld [vmem:[%s3468_s5 + $0x178] sm:$0xf0] }
 0x136   :  { %v2357_v52 = vld [vmem:[%s3468_s5 + $0x38c] sm:$0xf]  ;;  %v2060_v53 = vld [vmem:[%s3468_s5 + $0x398] sm:$0xf0]  ;;  %v1791_v55 = vor.u32 %v2289_v44, %v1788_v45  ;;  %v2372_v44 = vld [vmem:[%s3470_s7] sm:$0xff] }
 0x137   :  { %1163 = vmatpush.bf16.msra.mxu2 %v1947_v9  ;;  %1176 = vmatpush.bf16.msra.mxu3 %v2075_v10  ;;  %v2337_v9 = vld [vmem:[%s3468_s5 + $0x2ec] sm:$0xf]  ;;  %v1980_v10 = vld [vmem:[%s3468_s5 + $0x2f8] sm:$0xf0]  ;;  %v2384_v45 = vld [vmem:[%s3470_s7 + $0x60] sm:$0xff] }
 0x138   :  { %1091 = vmatmul.bf16.vlgmr.msrb.gmra.mxu0 %v2962_v21  ;;  %1104 = vmatmul.bf16.vlgmr.msrb.gmra.mxu1 %v2964_v22  ;;  %v2253_v56 = vld [vmem:[%s3468_s5 + $0x4c] sm:$0xf]  ;;  %v1644_v57 = vld [vmem:[%s3468_s5 + $0x58] sm:$0xf0] }
 0x139   :  { %1139 = vmatpush.bf16.msra.mxu0 %v1659_v15  ;;  %1152 = vmatpush.bf16.msra.mxu1 %v1787_v16  ;;  %v2265_v15 = vld [vmem:[%s3468_s5 + $0xac] sm:$0xf]  ;;  %v1867_v16 = vor.u32 %v2311_v6, %v1866_v5  ;;  %v1916_v63 = vld [vmem:[%s3468_s5 + $0x278] sm:$0xf0] }
 0x13a   :  { %v2321_v62 = vld [vmem:[%s3468_s5 + $0x26c] sm:$0xf]  ;;  %v1628_v6 = vld [vmem:[%s3468_s5 + $0x38] sm:$0xf0] }
 0x13b   :  { %1164 = vmatpush.bf16.msra.mxu2 %v1931_v23  ;;  %1177 = vmatpush.bf16.msra.mxu3 %v2059_v24  ;;  %v1983_v23 = vor.u32 %v2337_v9, %v1980_v10  ;;  %v2111_v24 = vor.u32 %v2369_v11, %v2108_v12  ;;  %v2353_v0 = vld [vmem:[%s3468_s5 + $0x36c] sm:$0xf]  ;;  %v1756_v8 = vld [vmem:[%s3468_s5 + $0x138] sm:$0xf0]  ;;  %v1919_v9 = vor.u32 %v2321_v62, %v1916_v63 }
 0x13c   :  { %v2249_v5 = vld [vmem:[%s3468_s5 + $0x2c] sm:$0xf]  ;;  %v1900_v12 = vld [vmem:[%s3468_s5 + $0x258] sm:$0xf0] }
 0x13d   :  { %1140 = vmatpush.bf16.msra.mxu0 %v1643_v29  ;;  %1153 = vmatpush.bf16.msra.mxu1 %v1771_v30  ;;  %v1695_v29 = vor.u32 %v2265_v15, %v1692_v18  ;;  %v1823_v30 = vor.u32 %v2297_v19, %v1820_v20  ;;  %v2281_v7 = vld [vmem:[%s3468_s5 + $0x12c] sm:$0xf]  ;;  %v1631_v15 = vor.u32 %v2249_v5, %v1628_v6  ;;  %v1612_v18 = vld [vmem:[%s3468_s5 + $0x18] sm:$0xf0] }
 0x13e   :  { %1117 = vmatmul.bf16.vlgmr.msrb.gmra.mxu2 %v3004_v49  ;;  %1130 = vmatmul.bf16.vlgmr.msrb.gmra.mxu3 %v3006_v50  ;;  %v2317_v11 = vld [vmem:[%s3468_s5 + $0x24c] sm:$0xf]  ;;  %v1740_v20 = vld [vmem:[%s3468_s5 + $0x118] sm:$0xf0] }
 0x13f   :  { %1165 = vmatpush.bf16.msra.mxu2 %v1915_v35  ;;  %1178 = vmatpush.bf16.msra.mxu3 %v2043_v36  ;;  %v1967_v35 = vor.u32 %v2333_v25, %v1964_v26  ;;  %v2095_v36 = vor.u32 %v2365_v27, %v2092_v28  ;;  %v2277_v19 = vld [vmem:[%s3468_s5 + $0x10c] sm:$0xf]  ;;  %v1884_v26 = vld [vmem:[%s3468_s5 + $0x238] sm:$0xf0] }
 0x140   :  { %v2313_v25 = vld [vmem:[%s3468_s5 + $0x22c] sm:$0xf]  ;;  %v2012_v28 = vld [vmem:[%s3468_s5 + $0x338] sm:$0xf0] }
 0x141   :  { %1141 = vmatpush.bf16.msra.mxu0 %v1627_v40  ;;  %1154 = vmatpush.bf16.msra.mxu1 %v1755_v41  ;;  %v1679_v40 = vor.u32 %v2261_v31, %v1676_v32  ;;  %v1807_v41 = vor.u32 %v2293_v33, %v1804_v34  ;;  %v2345_v27 = vld [vmem:[%s3468_s5 + $0x32c] sm:$0xf]  ;;  %v2379_v31 = vld [vmem:[%s3470_s7 + $0x38] sm:$0xff]  ;;  %v1887_v32 = vor.u32 %v2313_v25, %v1884_v26 }
 0x142   :  { %v2015_v33 = vor.u32 %v2345_v27, %v2012_v28  ;;  %v2309_v34 = vld [vmem:[%s3468_s5 + $0x20c] sm:$0xf]  ;;  %v1996_v37 = vld [vmem:[%s3468_s5 + $0x318] sm:$0xf0]  ;;  %v2400_v28 = vld [vmem:[%s3470_s7 + $0xe0] sm:$0xff] }
 0x143   :  { %1166 = vmatpush.bf16.msra.mxu2 %v1899_v48  ;;  %1179 = vmatpush.bf16.msra.mxu3 %v2027_v51  ;;  %v2325_v48 = vld [vmem:[%s3468_s5 + $0x28c] sm:$0xf]  ;;  %v1932_v51 = vld [vmem:[%s3468_s5 + $0x298] sm:$0xf0] }
 0x144   :  { %v2373_v42 = vld [vmem:[%s3470_s7 + $0x8] sm:$0xff] }
 0x145   :  { %1142 = vmatpush.bf16.msra.mxu0 %v1611_v58  ;;  %1155 = vmatpush.bf16.msra.mxu1 %v1739_v59  ;;  %v2285_v58 = vld [vmem:[%s3468_s5 + $0x14c] sm:$0xf]  ;;  %v1772_v59 = vld [vmem:[%s3468_s5 + $0x158] sm:$0xf0] }
 0x146   :  { %v1775_v4 = vor.u32 %v2285_v58, %v1772_v59  ;;  %v2385_v43 = vld [vmem:[%s3470_s7 + $0x68] sm:$0xff]  ;;  %v2392_v58 = vld [vmem:[%s3470_s7 + $0xa0] sm:$0xff] }
 0x147   :  { %1167 = vmatpush.bf16.msra.mxu2 %v1883_v1  ;;  %1180 = vmatpush.bf16.msra.mxu3 %v2011_v3  ;;  %v2044_v1 = vld [vmem:[%s3468_s5 + $0x378] sm:$0xf0]  ;;  %v1647_v3 = vor.u32 %v2253_v56, %v1644_v57  ;;  %v3409_v56 = vld [vmem:[%s3469_s6] sm:$0xf]  ;;  %v2389_v6 = vld [vmem:[%s3470_s7 + $0x88] sm:$0xff] }
 0x148   :  { %1143 = vmatmul.bf16.vlgmr.msra.gmra.mxu0 %v2962_v21  ;;  %1156 = vmatmul.bf16.vlgmr.msra.gmra.mxu1 %v2964_v22  ;;  %v2047_v10 = vor.u32 %v2353_v0, %v2044_v1  ;;  %v2380_v57 = vld [vmem:[%s3470_s7 + $0x40] sm:$0xff]  ;;  %v383_v59 = vperm.slane %v3409_v56, 0  ;;  %v2390_v0 = vld [vmem:[%s3470_s7 + $0x90] sm:$0xff] }
 0x149   :  { %1187 = vmatpush.bf16.msrb.mxu0 %v1727_v60  ;;  %1200 = vmatpush.bf16.msrb.mxu1 %v1855_v61  ;;  %v1935_v60 = vor.u32 %v2325_v48, %v1932_v51  ;;  %v2063_v61 = vor.u32 %v2357_v52, %v2060_v53  ;;  %v2382_v48 = vld [vmem:[%s3470_s7 + $0x50] sm:$0xff]  ;;  %v2381_v52 = vld [vmem:[%s3470_s7 + $0x48] sm:$0xff] }
 0x14a   :  { %v2394_v51 = vld [vmem:[%s3470_s7 + $0xb0] sm:$0xff]  ;;  %v2393_v53 = vld [vmem:[%s3470_s7 + $0xa8] sm:$0xff] }
 0x14b   :  { %1168 = vmatpush.bf16.msra.mxu2 %v1867_v16  ;;  %1181 = vmatpush.bf16.msra.mxu3 %v1995_v17  ;;  %v1759_v16 = vor.u32 %v2281_v7, %v1756_v8  ;;  %v2245_v17 = vld [vmem:[%s3468_s5 + $0xc] sm:$0xf] }
 0x14d   :  { %1188 = vmatpush.bf16.msrb.mxu0 %v1711_v13  ;;  %1201 = vmatpush.bf16.msrb.mxu1 %v1839_v14  ;;  %v2349_v13 = vld [vmem:[%s3468_s5 + $0x34c] sm:$0xf]  ;;  %v2028_v14 = vld [vmem:[%s3468_s5 + $0x358] sm:$0xf0] }
 0x14e   :  { %1169 = vmatmul.bf16.vlgmr.msra.gmra.mxu2 %v3004_v49  ;;  %1182 = vmatmul.bf16.vlgmr.msra.gmra.mxu3 %v3006_v50 }
 0x14f   :  { %1213 = vmatpush.bf16.msrb.mxu2 %v1983_v23  ;;  %1226 = vmatpush.bf16.msrb.mxu3 %v2111_v24  ;;  %v1903_v23 = vor.u32 %v2317_v11, %v1900_v12  ;;  %v2031_v24 = vor.u32 %v2349_v13, %v2028_v14  ;;  %v2388_v11 = vld [vmem:[%s3470_s7 + $0x80] sm:$0xff]  ;;  %v2403_v12 = vld [vmem:[%s3470_s7 + $0xf8] sm:$0xff]  ;;  %v384_v14 = vperm.slane %v3409_v56, 1 }
 0x151   :  { %1189 = vmatpush.bf16.msrb.mxu0 %v1695_v29  ;;  %1202 = vmatpush.bf16.msrb.mxu1 %v1823_v30  ;;  %v1615_v29 = vor.u32 %v2245_v17, %v1612_v18  ;;  %v1743_v30 = vor.u32 %v2277_v19, %v1740_v20  ;;  %v2402_v17 = vld [vmem:[%s3470_s7 + $0xf0] sm:$0xff]  ;;  %v2401_v19 = vld [vmem:[%s3470_s7 + $0xe8] sm:$0xff] }
 0x153   :  { %1214 = vmatpush.bf16.msrb.mxu2 %v1967_v35  ;;  %1227 = vmatpush.bf16.msrb.mxu3 %v2095_v36  ;;  %v1868_v35 = vld [vmem:[%s3468_s5 + $0x218] sm:$0xf0]  ;;  %v2341_v36 = vld [vmem:[%s3468_s5 + $0x30c] sm:$0xf] }
 0x154   :  { %v1871_v39 = vor.u32 %v2309_v34, %v1868_v35  ;;  %v1999_v2 = vor.u32 %v2341_v36, %v1996_v37  ;;  %v385_v35 = vperm.slane %v3409_v56, 2 }
 0x155   :  { %1190 = vmatpush.bf16.msrb.mxu0 %v1679_v40  ;;  %1203 = vmatpush.bf16.msrb.mxu1 %v1807_v41  ;;  %v2377_v40 = vld [vmem:[%s3470_s7 + $0x28] sm:$0xff]  ;;  %v2376_v41 = vld [vmem:[%s3470_s7 + $0x20] sm:$0xff] }
 0x157   :  { %1215 = vmatpush.bf16.msrb.mxu2 %v1951_v46  ;;  %1228 = vmatpush.bf16.msrb.mxu3 %v2079_v47  ;;  %v2383_v46 = vld [vmem:[%s3470_s7 + $0x58] sm:$0xff] }
 0x158   :  { %v2395_v47 = vld [vmem:[%s3470_s7 + $0xb8] sm:$0xff] }
 0x159   :  { %1191 = vmatpush.bf16.msrb.mxu0 %v1663_v54  ;;  %1204 = vmatpush.bf16.msrb.mxu1 %v1791_v55 }
 0x15b   :  { %1216 = vmatpush.bf16.msrb.mxu2 %v1935_v60  ;;  %1229 = vmatpush.bf16.msrb.mxu3 %v2063_v61  ;;  %v2391_v60 = vld [vmem:[%s3470_s7 + $0x98] sm:$0xff] }
 0x15d   :  { %1192 = vmatpush.bf16.msrb.mxu0 %v1647_v3  ;;  %1205 = vmatpush.bf16.msrb.mxu1 %v1775_v4 }
 0x15f   :  { %1217 = vmatpush.bf16.msrb.mxu2 %v1919_v9  ;;  %1230 = vmatpush.bf16.msrb.mxu3 %v2047_v10 }
 0x161   :  { %1193 = vmatpush.bf16.msrb.mxu0 %v1631_v15  ;;  %1206 = vmatpush.bf16.msrb.mxu1 %v1759_v16 }
 0x163   :  { %1218 = vmatpush.bf16.msrb.mxu2 %v1903_v23  ;;  %1231 = vmatpush.bf16.msrb.mxu3 %v2031_v24 }
 0x165   :  { %1194 = vmatpush.bf16.msrb.mxu0 %v1615_v29  ;;  %1207 = vmatpush.bf16.msrb.mxu1 %v1743_v30 }
 0x167   :  { %1219 = vmatpush.bf16.msrb.mxu2 %v1887_v32  ;;  %1232 = vmatpush.bf16.msrb.mxu3 %v2015_v33  ;;  %v2399_v32 = vld [vmem:[%s3470_s7 + $0xd8] sm:$0xff] }
 0x168   :  { %1195 = vmatmul.bf16.vlgmr.msrb.gmra.mxu0 %v2962_v21  ;;  %1208 = vmatmul.bf16.vlgmr.msrb.gmra.mxu1 %v2964_v22  ;;  %v2387_v21 = vld [vmem:[%s3470_s7 + $0x78] sm:$0xff] }
 0x169   :  { %1507 = vmatpush.bf16.msra.mxu0 %v2379_v31  ;;  %v2375_v22 = vld [vmem:[%s3470_s7 + $0x18] sm:$0xff]  ;;  %1520 = vmatpush.bf16.msra.mxu1 %v2387_v21 }
 0x16b   :  { %1220 = vmatpush.bf16.msrb.mxu2 %v1871_v39  ;;  %1233 = vmatpush.bf16.msrb.mxu3 %v1999_v2 }
 0x16d   :  { %1508 = vmatpush.bf16.msra.mxu0 %v2378_v38  ;;  %v2398_v38 = vld [vmem:[%s3470_s7 + $0xd0] sm:$0xff] }
 0x16e   :  { %1221 = vmatmul.bf16.vlgmr.msrb.gmra.mxu2 %v3004_v49  ;;  %1234 = vmatmul.bf16.vlgmr.msrb.gmra.mxu3 %v3006_v50  ;;  %v2374_v49 = vld [vmem:[%s3470_s7 + $0x10] sm:$0xff] }
 0x16f   :  { %v2386_v50 = vld [vmem:[%s3470_s7 + $0x70] sm:$0xff]  ;;  %1533 = vmatpush.bf16.msra.mxu2 %v2395_v47  ;;  %1546 = vmatpush.bf16.msra.mxu3 %v2403_v12 }
 0x170   :  { %1521 = vmatpush.bf16.msra.mxu1 %v2386_v50  ;;  %v2396_v50 = vld [vmem:[%s3470_s7 + $0xc0] sm:$0xff] }
 0x171   :  { %1509 = vmatpush.bf16.msra.mxu0 %v2377_v40 }
 0x173   :  { %1534 = vmatpush.bf16.msra.mxu2 %v2394_v51  ;;  %1547 = vmatpush.bf16.msra.mxu3 %v2402_v17 }
 0x174   :  { %1522 = vmatpush.bf16.msra.mxu1 %v2385_v43 }
 0x175   :  { %1510 = vmatpush.bf16.msra.mxu0 %v2376_v41  ;;  %v2397_v41 = vld [vmem:[%s3470_s7 + $0xc8] sm:$0xff] }
 0x177   :  { %1535 = vmatpush.bf16.msra.mxu2 %v2393_v53  ;;  %1548 = vmatpush.bf16.msra.mxu3 %v2401_v19 }
 0x178   :  { %1523 = vmatpush.bf16.msra.mxu1 %v2384_v45 }
 0x179   :  { %1511 = vmatpush.bf16.msra.mxu0 %v2375_v22 }
 0x17b   :  { %1536 = vmatpush.bf16.msra.mxu2 %v2392_v58  ;;  %1549 = vmatpush.bf16.msra.mxu3 %v2400_v28 }
 0x17c   :  { %1524 = vmatpush.bf16.msra.mxu1 %v2383_v46 }
 0x17d   :  { %1512 = vmatpush.bf16.msra.mxu0 %v2374_v49 }
 0x17f   :  { %1537 = vmatpush.bf16.msra.mxu2 %v2391_v60  ;;  %1550 = vmatpush.bf16.msra.mxu3 %v2399_v32 }
 0x180   :  { %1525 = vmatpush.bf16.msra.mxu1 %v2382_v48 }
 0x181   :  { %1513 = vmatpush.bf16.msra.mxu0 %v2373_v42 }
 0x183   :  { %1538 = vmatpush.bf16.msra.mxu2 %v2390_v0  ;;  %1551 = vmatpush.bf16.msra.mxu3 %v2398_v38 }
 0x184   :  { %1526 = vmatpush.bf16.msra.mxu1 %v2381_v52  ;;  %v386_v52 = vperm.slane %v3409_v56, 3  ;;  %v2405_v56 = vld [vmem:[%s3471_s8] ss:$0 sm:$0xff] }
 0x185   :  { %1514 = vmatpush.bf16.msra.mxu0 %v2372_v44 }
 0x187   :  { %1539 = vmatpush.bf16.msra.mxu2 %v2389_v6  ;;  %1552 = vmatpush.bf16.msra.mxu3 %v2397_v41 }
 0x188   :  { %1527 = vmatpush.bf16.msra.mxu1 %v2380_v57 }
 0x18b   :  { %1540 = vmatpush.bf16.msra.mxu2 %v2388_v11  ;;  %1553 = vmatpush.bf16.msra.mxu3 %v2396_v50 }
 0x1a4   :  { %v1040_v54 = vpop.f32.mrf.mxu0  ;;  %v1053_v55 = vpop.f32.mrf.mxu1 }
 0x1a5   :  { %v1041_v61 = vadd.f32 %v1040_v54, %v383_v59 }
 0x1a7   :  { %v1054_v1 = vadd.f32 %v1053_v55, %v1041_v61 }
 0x1ac   :  { %v1042_v62 = vpop.f32.mrf.mxu0  ;;  %v1055_v63 = vpop.f32.mrf.mxu1 }
 0x1b1   :  { %v1066_v3 = vpop.f32.mrf.mxu2  ;;  %v1079_v4 = vpop.f32.mrf.mxu3 }
 0x1b2   :  { %v1067_v5 = vadd.f32 %v1066_v3, %v1054_v1 }
 0x1b4   :  { %v1080_v7 = vadd.f32 %v1079_v4, %v1067_v5 }
 0x1b5   :  { %v1092_v8 = vpop.f32.mrf.mxu0  ;;  %v1105_v9 = vpop.f32.mrf.mxu1 }
 0x1b6   :  { %v1239_v10 = vmax.f32 %v1080_v7, 0.0  ;;  %v1093_v18 = vadd.f32 %v1092_v8, %v384_v14 }
 0x1b8   :  { %v1243_v13 = vpack.c.bf16 %v1239_v10, %v1239_v10  ;;  %v1106_v24 = vadd.f32 %v1105_v9, %v1093_v18 }
 0x1b9   :  { %v1068_v15 = vpop.f32.mrf.mxu2  ;;  %v1081_v16 = vpop.f32.mrf.mxu3 }
 0x1ba   :  { %1515 = vmatmul.bf16.vlgmr.msra.gmra.mxu0 %v1243_v13 }
 0x1bd   :  { %v1094_v20 = vpop.f32.mrf.mxu0  ;;  %v1107_v23 = vpop.f32.mrf.mxu1 }
 0x1c1   :  { %v1118_v25 = vpop.f32.mrf.mxu2  ;;  %v1131_v26 = vpop.f32.mrf.mxu3 }
 0x1c2   :  { %v1119_v27 = vadd.f32 %v1118_v25, %v1106_v24 }
 0x1c4   :  { %v1132_v29 = vadd.f32 %v1131_v26, %v1119_v27 }
 0x1c5   :  { %v1144_v30 = vpop.f32.mrf.mxu0  ;;  %v1157_v31 = vpop.f32.mrf.mxu1 }
 0x1c6   :  { %v1240_v33 = vmax.f32 %v1132_v29, 0.0  ;;  %v1145_v39 = vadd.f32 %v1144_v30, %v385_v35 }
 0x1c8   :  { %v1244_v34 = vpack.c.bf16 %v1240_v33, %v1240_v33  ;;  %v1158_v21 = vadd.f32 %v1157_v31, %v1145_v39 }
 0x1c9   :  { %v1120_v36 = vpop.f32.mrf.mxu2  ;;  %v1133_v37 = vpop.f32.mrf.mxu3 }
 0x1ca   :  { %1528 = vmatmul.bf16.vlgmr.msra.gmra.mxu1 %v1244_v34 }
 0x1cd   :  { %v1146_v2 = vpop.f32.mrf.mxu0  ;;  %v1159_v40 = vpop.f32.mrf.mxu1 }
 0x1d1   :  { %v1170_v22 = vpop.f32.mrf.mxu2  ;;  %v1183_v49 = vpop.f32.mrf.mxu3 }
 0x1d2   :  { %v1171_v42 = vadd.f32 %v1170_v22, %v1158_v21 }
 0x1d4   :  { %v1184_v43 = vadd.f32 %v1183_v49, %v1171_v42 }
 0x1d6   :  { %v1241_v44 = vmax.f32 %v1184_v43, 0.0 }
 0x1d8   :  { %v1245_v45 = vpack.c.bf16 %v1241_v44, %v1241_v44 }
 0x1d9   :  { %v1172_v46 = vpop.f32.mrf.mxu2  ;;  %v1185_v47 = vpop.f32.mrf.mxu3 }
 0x1da   :  { %1541 = vmatmul.bf16.vlgmr.msra.gmra.mxu2 %v1245_v45 }
 0x1e5   :  { %v1196_v48 = vpop.f32.mrf.mxu0  ;;  %v1209_v51 = vpop.f32.mrf.mxu1 }
 0x1e6   :  { %v1197_v53 = vadd.f32 %v1196_v48, %v386_v52 }
 0x1e8   :  { %v1210_v57 = vadd.f32 %v1209_v51, %v1197_v53 }
 0x1ed   :  { %v1198_v54 = vpop.f32.mrf.mxu0  ;;  %v1211_v55 = vpop.f32.mrf.mxu1 }
 0x1f1   :  { %v1222_v58 = vpop.f32.mrf.mxu2  ;;  %v1235_v59 = vpop.f32.mrf.mxu3 }
 0x1f2   :  { %v1223_v60 = vadd.f32 %v1222_v58, %v1210_v57 }
 0x1f4   :  { %v1236_v61 = vadd.f32 %v1235_v59, %v1223_v60 }
 0x1f6   :  { %v1242_v62 = vmax.f32 %v1236_v61, 0.0 }
 0x1f8   :  { %v1246_v63 = vpack.c.bf16 %v1242_v62, %v1242_v62 }
 0x1f9   :  { %v1224_v0 = vpop.f32.mrf.mxu2  ;;  %v1237_v1 = vpop.f32.mrf.mxu3 }
 0x1fa   :  { %1554 = vmatmul.bf16.vlgmr.msra.gmra.mxu3 %v1246_v63 }
 0x237   :  { %v1516_v3 = vpop.f32.mrf.mxu0 }
 0x238   :  { %v1517_v9 = vadd.f32 %v2405_v56, %v1516_v3 }
 0x23f   :  { %v1518_v4 = vpop.f32.mrf.mxu0 }
 0x247   :  { %v1529_v5 = vpop.f32.mrf.mxu1 }
 0x248   :  { %v1530_v10 = vadd.f32 %v1529_v5, %v1517_v9 }
 0x24f   :  { %v1531_v6 = vpop.f32.mrf.mxu1 }
 0x25d   :  { %v1542_v7 = vpop.f32.mrf.mxu2 }
 0x25e   :  { %v1543_v11 = vadd.f32 %v1542_v7, %v1530_v10 }
 0x265   :  { %v1544_v8 = vpop.f32.mrf.mxu2 }
 0x27d   :  { %v1555_v12 = vpop.f32.mrf.mxu3 }
 0x27e   :  { %v1556_v13 = vadd.f32 %v1555_v12, %v1543_v11 }
 0x280   :  { %1559 = vst [vmem:[#allocation2] sm:$0xff] %v1556_v13 }
 0x281   :  { %1570 = dma.vmem_to_hbm [thread:$0]  %s1566_s20, 128, %s1568_s23, [#allocation3]  }
 0x285   :  { %v1557_v14 = vpop.f32.mrf.mxu3 }
 0x286   :  { %2434 = dma.done.wait [#allocation3], 128  }
 0x287   :  { %2435 = vsyncadd [#allocation3], 4294967168 }
 0x288   :  { %1575 = vsyncpa [#allocation3], 1 }

</bundles_post_ra>
